<compile_context>
chip_gen: v5e
topology: v5e:2x2
jax: 0.10.0
libtpu: 0.0.40
codegen_flags: <defaults>
</compile_context>

<pallas_src>
import functools

import jax
import jax.numpy as jnp
from jax.experimental import pallas as pl
from jax.experimental.pallas import tpu as pltpu


def _round_up(v, m):
    return ((v + m - 1) // m) * m


def _actor_kernel(x_ref, w1_ref, b12_ref, wh_ref, bh_ref, w2_ref,
                  out_ref, *, action_dim):
    # x tile arrives f32 [state_dim, tm]; cast to bf16 for the MXU.
    x_t = x_ref[...].astype(jnp.bfloat16)

    # fc1 + ReLU   (bf16 operands, f32 accumulation; elementwise in f32)
    h1 = jnp.dot(w1_ref[...], x_t, preferred_element_type=jnp.float32)   # [H, tm]
    h1 = jnp.maximum(h1 + b12_ref[:, 0:1], 0.0)

    # fc2 + ReLU
    h2 = jnp.dot(w2_ref[...], h1.astype(jnp.bfloat16),
                 preferred_element_type=jnp.float32)                     # [H, tm]
    h2 = jnp.maximum(h2 + b12_ref[:, 1:2], 0.0)

    # fused head: rows [0, A) are mean logits, rows [A, 2A) are std logits
    z = jnp.dot(wh_ref[...], h2.astype(jnp.bfloat16),
                preferred_element_type=jnp.float32) + bh_ref[...]        # [2A, tm]

    mean_full = jnp.tanh(z) * 2.0
    # numerically stable single-exp softplus: max(z,0) + log1p(exp(-|z|))
    std_full = jnp.maximum(z, 0.0) + jnp.log1p(jnp.exp(-jnp.abs(z))) + 0.001

    # per-row select (first A rows -> mean, last A rows -> std), one lane-dense
    # store of the whole [2A, tm] slab.
    row = jax.lax.broadcasted_iota(jnp.int32, z.shape, dimension=0)
    out_ref[...] = jnp.where(row < action_dim, mean_full, std_full)


def actor_forward(x, params, *, tm=None):
    """x: [B, state_dim] float32. params: packed dict (see pack_params)."""
    B, state_dim = x.shape
    two_a = params["bh"].shape[0]
    action_dim = two_a // 2
    hidden = params["w1"].shape[0]

    # Batch-tile policy (see header): full tile for small B, otherwise
    # 256-aligned tiles capped at 1024 with >= 2 blocks for v7x's 2 TCs.
    if tm is None:
        if B <= 512:
            tm = max(8, _round_up(B, 8))
        else:
            tm = min(1024, _round_up(pl.cdiv(B, 2), 256))
    n_blocks = pl.cdiv(B, tm)
    b_pad = n_blocks * tm

    # feature-major input layout: [state_dim, B] (lane-dense along batch)
    x_t = x.T
    if b_pad != B:
        x_t = jnp.pad(x_t, ((0, 0), (0, b_pad - B)))

    # computed VMEM budget (double-buffered x/out tiles, resident weights,
    # f32+bf16 intermediates), generous 4x slack, 8 MiB floor, 48 MiB cap.
    w_bytes = (params["w1"].size + params["w2"].size + params["wh"].size) * 2 \
              + (params["b12"].size + params["bh"].size) * 4
    tile_io = (tm * state_dim * 4 + two_a * tm * 4) * 2
    interm = tm * hidden * 4 * 4
    vmem_limit = int(min(max(4 * (tile_io + 2 * w_bytes + interm),
                             8 * 1024 * 1024),
                         48 * 1024 * 1024))

    # weights / biases: full-array blocks, resident in VMEM across the grid.
    resident = lambda arr: pl.BlockSpec(arr.shape, lambda i: (0, 0))

    kernel = functools.partial(_actor_kernel, action_dim=action_dim)

    out = pl.pallas_call(
        kernel,
        out_shape=jax.ShapeDtypeStruct((two_a, b_pad), jnp.float32),
        grid=(n_blocks,),
        in_specs=[
            pl.BlockSpec((state_dim, tm), lambda i: (0, i)),   # x^T (batch-blocked)
            resident(params["w1"]),
            resident(params["b12"]),
            resident(params["wh"]),
            resident(params["bh"]),
            resident(params["w2"]),
        ],
        out_specs=pl.BlockSpec((two_a, tm), lambda i: (0, i)),
        compiler_params=pltpu.CompilerParams(
            dimension_semantics=("parallel",),
            vmem_limit_bytes=vmem_limit,
        ),
    )(x_t, params["w1"], params["b12"], params["wh"], params["bh"], params["w2"])

    mean = out[:action_dim, :B].T
    std = out[action_dim:, :B].T
    return mean, std


def init_params(key, state_dim, action_dim, hidden_dim):
    """Deterministic init (uniform, torch-linear-like bounds). Weights [in, out] f32."""
    ks = jax.random.split(key, 8)

    def linear(kw, kb, fan_in, fan_out):
        bound = 1.0 / jnp.sqrt(fan_in)
        w = jax.random.uniform(kw, (fan_in, fan_out), jnp.float32, -bound, bound)
        b = jax.random.uniform(kb, (1, fan_out), jnp.float32, -bound, bound)
        return w, b

    w1, b1 = linear(ks[0], ks[1], state_dim, hidden_dim)
    w2, b2 = linear(ks[2], ks[3], hidden_dim, hidden_dim)
    wm, bm = linear(ks[4], ks[5], hidden_dim, action_dim)
    ws, bs = linear(ks[6], ks[7], hidden_dim, action_dim)
    return dict(w1=w1, b1=b1, w2=w2, b2=b2, wm=wm, bm=bm, ws=ws, bs=bs)


def pack_params(p):
    """Kernel layout: torch-style [out, in] bf16 weights, fused head, f32 biases."""
    t_bf16 = lambda w: jnp.asarray(w.T, jnp.bfloat16)
    return dict(
        w1=t_bf16(p["w1"]),                                            # [H, S]  bf16
        w2=t_bf16(p["w2"]),                                            # [H, H]  bf16
        wh=jnp.concatenate([p["wm"], p["ws"]], axis=1).T.astype(jnp.bfloat16),  # [2A, H] bf16
        b12=jnp.concatenate([p["b1"], p["b2"]], axis=0).T,             # [H, 2]  f32
        bh=jnp.concatenate([p["bm"], p["bs"]], axis=1).T,              # [2A, 1] f32
    )


def actor_forward_ref(x, p):
    h1 = jnp.maximum(x @ p["w1"] + p["b1"], 0.0)
    h2 = jnp.maximum(h1 @ p["w2"] + p["b2"], 0.0)
    mean = jnp.tanh(h2 @ p["wm"] + p["bm"]) * 2.0
    std = jax.nn.softplus(h2 @ p["ws"] + p["bs"]) + 0.001
    return mean, std


if __name__ == "__main__":
    key = jax.random.PRNGKey(0)
    k_param, k_x = jax.random.split(key)

    batch, state_dim, action_dim, hidden_dim = 8, 4, 2, 32
    params = init_params(k_param, state_dim, action_dim, hidden_dim)
    packed = pack_params(params)
    x = jax.random.normal(k_x, (batch, state_dim), jnp.float32)

    mean, std = actor_forward(x, packed)
    jax.block_until_ready((mean, std))

    mean_ref, std_ref = actor_forward_ref(x, params)
    assert mean.shape == (batch, action_dim) and std.shape == (batch, action_dim)
    # bf16 MXU operands (f32 accumulation) -> relaxed tolerance vs f32 reference.
    assert jnp.allclose(mean, mean_ref, atol=3e-2, rtol=3e-2)
    assert jnp.allclose(std, std_ref, atol=3e-2, rtol=3e-2)
    assert bool(jnp.all(std > 0.0))

    print("KERNEL_OK")
</pallas_src>

<mosaic_0001>
module attributes {stable_mosaic.version = 11 : i64} {
  func.func @_actor_kernel(%arg0: i32, %arg1: memref<4x8xf32, #tpu.memory_space<vmem>>, %arg2: memref<32x4xbf16, #tpu.memory_space<vmem>>, %arg3: memref<32x2xf32, #tpu.memory_space<vmem>>, %arg4: memref<4x32xbf16, #tpu.memory_space<vmem>>, %arg5: memref<4x1xf32, #tpu.memory_space<vmem>>, %arg6: memref<32x32xbf16, #tpu.memory_space<vmem>>, %arg7: memref<4x8xf32, #tpu.memory_space<vmem>>) attributes {dimension_semantics = [#tpu.dimension_semantics<parallel>], iteration_bounds = array<i64: 1>, scalar_prefetch = 0 : i64, scratch_operands = 0 : i64, tpu.core_type = #tpu.core_type<tc>, window_params = [{transform_indices = @transform_0, window_bounds = array<i64: 4, 8>}, {pipeline_mode = #tpu.pipeline_mode<synchronous>, transform_indices = @transform_1, window_bounds = array<i64: 32, 4>}, {pipeline_mode = #tpu.pipeline_mode<synchronous>, transform_indices = @transform_2, window_bounds = array<i64: 32, 2>}, {pipeline_mode = #tpu.pipeline_mode<synchronous>, transform_indices = @transform_3, window_bounds = array<i64: 4, 32>}, {pipeline_mode = #tpu.pipeline_mode<synchronous>, transform_indices = @transform_4, window_bounds = array<i64: 4, 1>}, {pipeline_mode = #tpu.pipeline_mode<synchronous>, transform_indices = @transform_5, window_bounds = array<i64: 32, 32>}, {transform_indices = @transform_6, window_bounds = array<i64: 4, 8>}]} {
    %c0 = arith.constant 0 : index
    %c0_0 = arith.constant 0 : index
    %0 = vector.load %arg1[%c0, %c0_0] : memref<4x8xf32, #tpu.memory_space<vmem>>, vector<4x8xf32>
    %1 = arith.truncf %0 : vector<4x8xf32> to vector<4x8xbf16>
    %c0_1 = arith.constant 0 : index
    %c0_2 = arith.constant 0 : index
    %2 = vector.load %arg2[%c0_1, %c0_2] : memref<32x4xbf16, #tpu.memory_space<vmem>>, vector<32x4xbf16>
    %cst = arith.constant dense<0.000000e+00> : vector<32x8xf32>
    %3 = tpu.matmul %2, %1, %cst {dimension_numbers = #tpu.dot_dimension_numbers<[1], [0], [0], [1], [0, 0, 1, 1], [], []>} : vector<32x4xbf16>, vector<4x8xbf16>, vector<32x8xf32> -> vector<32x8xf32>
    %c0_3 = arith.constant 0 : index
    %c0_4 = arith.constant 0 : index
    %4 = vector.load %arg3[%c0_3, %c0_4] : memref<32x2xf32, #tpu.memory_space<vmem>>, vector<32x1xf32>
    %5 = vector.broadcast %4 : vector<32x1xf32> to vector<32x8xf32>
    %6 = arith.addf %3, %5 : vector<32x8xf32>
    %cst_5 = arith.constant 0.000000e+00 : f32
    %7 = vector.broadcast %cst_5 : f32 to vector<32x8xf32>
    %8 = arith.maximumf %6, %7 : vector<32x8xf32>
    %c0_6 = arith.constant 0 : index
    %c0_7 = arith.constant 0 : index
    %9 = vector.load %arg6[%c0_6, %c0_7] : memref<32x32xbf16, #tpu.memory_space<vmem>>, vector<32x32xbf16>
    %10 = arith.truncf %8 : vector<32x8xf32> to vector<32x8xbf16>
    %cst_8 = arith.constant dense<0.000000e+00> : vector<32x8xf32>
    %11 = tpu.matmul %9, %10, %cst_8 {dimension_numbers = #tpu.dot_dimension_numbers<[1], [0], [0], [1], [0, 0, 1, 1], [], []>} : vector<32x32xbf16>, vector<32x8xbf16>, vector<32x8xf32> -> vector<32x8xf32>
    %c0_9 = arith.constant 0 : index
    %c1 = arith.constant 1 : index
    %12 = vector.load %arg3[%c0_9, %c1] : memref<32x2xf32, #tpu.memory_space<vmem>>, vector<32x1xf32>
    %13 = vector.broadcast %12 : vector<32x1xf32> to vector<32x8xf32>
    %14 = arith.addf %11, %13 : vector<32x8xf32>
    %cst_10 = arith.constant 0.000000e+00 : f32
    %15 = vector.broadcast %cst_10 : f32 to vector<32x8xf32>
    %16 = arith.maximumf %14, %15 : vector<32x8xf32>
    %c0_11 = arith.constant 0 : index
    %c0_12 = arith.constant 0 : index
    %17 = vector.load %arg4[%c0_11, %c0_12] : memref<4x32xbf16, #tpu.memory_space<vmem>>, vector<4x32xbf16>
    %18 = arith.truncf %16 : vector<32x8xf32> to vector<32x8xbf16>
    %cst_13 = arith.constant dense<0.000000e+00> : vector<4x8xf32>
    %19 = tpu.matmul %17, %18, %cst_13 {dimension_numbers = #tpu.dot_dimension_numbers<[1], [0], [0], [1], [0, 0, 1, 1], [], []>} : vector<4x32xbf16>, vector<32x8xbf16>, vector<4x8xf32> -> vector<4x8xf32>
    %c0_14 = arith.constant 0 : index
    %c0_15 = arith.constant 0 : index
    %20 = vector.load %arg5[%c0_14, %c0_15] : memref<4x1xf32, #tpu.memory_space<vmem>>, vector<4x1xf32>
    %21 = vector.broadcast %20 : vector<4x1xf32> to vector<4x8xf32>
    %22 = arith.addf %19, %21 : vector<4x8xf32>
    %23 = math.tanh %22 : vector<4x8xf32>
    %cst_16 = arith.constant 2.000000e+00 : f32
    %24 = vector.broadcast %cst_16 : f32 to vector<4x8xf32>
    %25 = arith.mulf %23, %24 : vector<4x8xf32>
    %cst_17 = arith.constant 0.000000e+00 : f32
    %26 = vector.broadcast %cst_17 : f32 to vector<4x8xf32>
    %27 = arith.maximumf %22, %26 : vector<4x8xf32>
    %28 = math.absf %22 : vector<4x8xf32>
    %cst_18 = arith.constant 0.000000e+00 : f32
    %29 = vector.broadcast %cst_18 : f32 to vector<4x8xf32>
    %30 = arith.subf %29, %28 : vector<4x8xf32>
    %31 = math.exp %30 : vector<4x8xf32>
    %32 = math.log1p %31 : vector<4x8xf32>
    %33 = arith.addf %27, %32 : vector<4x8xf32>
    %cst_19 = arith.constant 1.000000e-03 : f32
    %34 = vector.broadcast %cst_19 : f32 to vector<4x8xf32>
    %35 = arith.addf %33, %34 : vector<4x8xf32>
    %36 = tpu.iota {dimensions = array<i32: 0>} : vector<4x8xi32>
    %c2_i32 = arith.constant 2 : i32
    %37 = vector.broadcast %c2_i32 : i32 to vector<4x8xi32>
    %38 = arith.cmpi slt, %36, %37 : vector<4x8xi32>
    %39 = arith.select %38, %25, %35 : vector<4x8xi1>, vector<4x8xf32>
    %c0_20 = arith.constant 0 : index
    %c0_21 = arith.constant 0 : index
    %40 = vector.load %arg7[%c0_20, %c0_21] : memref<4x8xf32, #tpu.memory_space<vmem>>, vector<4x8xf32>
    tpu.vector_store %arg7[%c0_20, %c0_21], %39 {strides = array<i32>} : memref<4x8xf32, #tpu.memory_space<vmem>>, vector<4x8xf32>,
    return
  }
  func.func @transform_0(%arg0: i32) -> (i32, i32) {
    %c0_i32 = arith.constant 0 : i32
    %c0_i32_0 = arith.constant 0 : i32
    return %c0_i32, %arg0 : i32, i32
  }
  func.func @transform_1(%arg0: i32) -> (i32, i32) {
    %c0_i32 = arith.constant 0 : i32
    %c0_i32_0 = arith.constant 0 : i32
    %c0_i32_1 = arith.constant 0 : i32
    return %c0_i32, %c0_i32_0 : i32, i32
  }
  func.func @transform_2(%arg0: i32) -> (i32, i32) {
    %c0_i32 = arith.constant 0 : i32
    %c0_i32_0 = arith.constant 0 : i32
    %c0_i32_1 = arith.constant 0 : i32
    return %c0_i32, %c0_i32_0 : i32, i32
  }
  func.func @transform_3(%arg0: i32) -> (i32, i32) {
    %c0_i32 = arith.constant 0 : i32
    %c0_i32_0 = arith.constant 0 : i32
    %c0_i32_1 = arith.constant 0 : i32
    return %c0_i32, %c0_i32_0 : i32, i32
  }
  func.func @transform_4(%arg0: i32) -> (i32, i32) {
    %c0_i32 = arith.constant 0 : i32
    %c0_i32_0 = arith.constant 0 : i32
    %c0_i32_1 = arith.constant 0 : i32
    return %c0_i32, %c0_i32_0 : i32, i32
  }
  func.func @transform_5(%arg0: i32) -> (i32, i32) {
    %c0_i32 = arith.constant 0 : i32
    %c0_i32_0 = arith.constant 0 : i32
    %c0_i32_1 = arith.constant 0 : i32
    return %c0_i32, %c0_i32_0 : i32, i32
  }
  func.func @transform_6(%arg0: i32) -> (i32, i32) {
    %c0_i32 = arith.constant 0 : i32
    %c0_i32_0 = arith.constant 0 : i32
    return %c0_i32, %arg0 : i32, i32
  }
}

</mosaic_0001>

<bundles_post_ra>
// kernel: tpu_custom_call.1
= control target key start
LH: loop header
LB: loop body
LE: loop exit
PB: predicated region body
PF: predicated region fallthrough
CT: control target
= control target key end

     0   :  { %vm72_vm0 = vcmask 1041408   ;;  %v295_v2 = vmov 0   ;;  %s372_s0 = inlined_call_operand.vmem [shape: f32[4,8], index: 0, kind: input, shape index: {}]   ;;  %s373_s1 = inlined_call_operand.vmem [shape: bf16[32,4], index: 1, kind: input, shape index: {}]   ;;  %s374_s2 = inlined_call_operand.vmem [shape: f32[32,2], index: 2, kind: input, shape index: {}]   ;;  %s375_s3 = inlined_call_operand.vmem [shape: bf16[4,32], index: 3, kind: input, shape index: {}]   ;;  %s376_s4 = inlined_call_operand.vmem [shape: f32[4,1], index: 4, kind: input, shape index: {}]   ;;  %s377_s5 = inlined_call_operand.vmem [shape: bf16[32,32], index: 5, kind: input, shape index: {}]   ;;  %s378_s6 = inlined_call_operand.hbm [shape: f32[4,8], index: 6, kind: output, shape index: {}]  }
   0x1   :  { %v25_v0 = vld [vmem:[%s372_s0] sm:$0xf]  ;;  %257 = vset.pattern.permute.xlu1 %v295_v2  ;;  %256 = vset.pattern.permute.xlu0 %v295_v2  ;;  %v33_v4 = vld [vmem:[%s374_s2 + $0x10] sm:$0xff] }
   0x2   :  { %v26_v1 = vpack.c.bf16 %v25_v0, %v25_v0  ;;  %v31_v3 = vld [vmem:[%s374_s2] sm:$0xff]  ;;  %47 = vperm.xlu0 %256, %v33_v4  }
   0x3   :  { %37 = vperm.xlu1 %257, %v31_v3  }
   0x4   :  { %11 = vsyncpa [#allocation3], 0  ;;  %v74_v5 = vsel %vm72_vm0, %v26_v1, 0  ;;  %v247_v6 = vld [vmem:[%s373_s1] sm:$0xff]  ;;  %vm65_vm1 = vcmask 31744   ;;  %v32_v7 = vld [vmem:[%s374_s2 + $0x8] sm:$0xff]  ;;  %v204_v62 = vlaneseq }
   0x5   :  { %83 = vmatpush.bf16.msra.mxu0 %v74_v5  ;;  %v34_v8 = vld [vmem:[%s374_s2 + $0x18] sm:$0xff]  ;;  %v248_v9 = vld [vmem:[%s373_s1 + $0x8] sm:$0xff]  ;;  %v296_v11 = vmov 1   ;;  %v249_v30 = vld [vmem:[%s377_s5] sm:$0xff]  ;;  %vm131_vm2 = vcmask 261120   ;;  %s217_s17 = sshll.u32 %s378_s6, 4  ;;  %s218_s17 = int_to_ptr.hbm [resolvable:$true] %s217_s17 }
   0x6   :  { %258 = vset.pattern.permute.xlu2 %v296_v11  ;;  %v250_v29 = vld [vmem:[%s377_s5 + $0x8] sm:$0xff]  ;;  %v164_v31 = vld [vmem:[%s376_s4] sm:$0xf]  ;;  %vm208_vm5 = vcmask 60416  }
   0x7   :  { %114 = vperm.xlu2 %258, %v33_v4   ;;  %v161_v50 = vld [vmem:[%s375_s3] sm:$0x3]  ;;  %s297_s3 = smov [#allocation2]  }
   0x8   :  { %234 = vmatmul.msk.bf16.vlgmr.msra.gmra.mxu0 %vm65_vm1, %v247_v6  ;;  %s215_s14 = sshll.u32 %s297_s3, 4  ;;  %s216_s14 = int_to_ptr.vmem [resolvable:$true] %s215_s14 }
   0xa   :  { %52 = vperm.xlu0 %256, %v34_v8  }
   0xb   :  { %42 = vperm.xlu1 %257, %v32_v7  }
   0xf   :  { %118 = vperm.xlu2 %258, %v34_v8  }
  0x12   :  { %259 = vset.pattern.permute.xlu0 %v296_v11 }
  0x13   :  { %260 = vset.pattern.permute.xlu1 %v296_v11  ;;  %106 = vperm.xlu0 %259, %v31_v3   ;;  %v205_v3 = vshrl.u32 %v204_v62, 7 }
  0x14   :  { %110 = vperm.xlu1 %260, %v32_v7  }
  0x15   :  { %vm206_vm4 = vcmp.lt.s32.totalorder %v205_v3, 2 }
  0x17   :  { %261 = vset.pattern.permute.xlu2 %v295_v2 }
  0x18   :  { %235 = vmatmul.msk.bf16.gmra.mxu0 %vm65_vm1, %v248_v9  ;;  %167 = vperm.xlu2 %261, %v164_v31  }
  0x1b   :  { %262 = vset.pattern.permute.xlu0 %v295_v2 }
  0x61   :  { %v115_v33 = vpop.permute.xlu2 %114 }
  0x69   :  { %v119_v39 = vpop.permute.xlu2 %118 }
  0x72   :  { %v168_v51 = vpop.permute.xlu2 %167 }
  0x74   :  { %v48_v14 = vpop.permute.xlu0 %47 }
  0x75   :  { %v38_v13 = vpop.permute.xlu1 %37 }
  0x7c   :  { %v53_v18 = vpop.permute.xlu0 %52 }
  0x7d   :  { %v43_v16 = vpop.permute.xlu1 %42 }
  0x85   :  { %v85_v10 = vpop.f32.mrf.mxu0  ;;  %v107_v35 = vpop.permute.xlu0 %106 }
  0x86   :  { %v86_v22 = vadd.f32 %v85_v10, %v38_v13  ;;  %v111_v36 = vpop.permute.xlu1 %110 }
  0x88   :  { %v95_v27 = vmax.f32 %v86_v22, 0.0 }
  0x8d   :  { %v87_v12 = vpop.f32.mrf.mxu0 }
  0x8e   :  { %v88_v20 = vadd.f32 %v87_v12, %v43_v16 }
  0x90   :  { %v96_v25 = vmax.f32 %v88_v20, 0.0 }
  0x92   :  { %v103_v28 = vpack.c.bf16 %v96_v25, %v95_v27 }
  0x95   :  { %v90_v15 = vpop.f32.mrf.mxu0 }
  0x96   :  { %v91_v17 = vadd.f32 %v90_v15, %v48_v14 }
  0x98   :  { %v97_v23 = vmax.f32 %v91_v17, 0.0 }
  0x9d   :  { %v92_v19 = vpop.f32.mrf.mxu0 }
  0x9e   :  { %v93_v21 = vadd.f32 %v92_v19, %v53_v18 }
  0xa0   :  { %v98_v24 = vmax.f32 %v93_v21, 0.0 }
  0xa2   :  { %v104_v26 = vpack.c.bf16 %v98_v24, %v97_v23 }
  0xa4   :  { %144 = vmatpush.bf16.msra.mxu1 %v104_v26  ;;  %251 = vmatpush.bf16.msra.mxu3 %v104_v26 }
  0xa8   :  { %145 = vmatpush.bf16.msra.mxu1 %v103_v28  ;;  %252 = vmatpush.bf16.msra.mxu3 %v103_v28 }
  0xab   :  { %245 = vmatmul.msk.bf16.vlgmr.msra.gmra.mxu3 %vm131_vm2, %v250_v29  ;;  %244 = vmatmul.msk.bf16.vlgmr.msra.gmra.mxu1 %vm131_vm2, %v249_v30 }
 0x128   :  { %v147_v32 = vpop.f32.mrf.mxu1 }
 0x129   :  { %v148_v41 = vadd.f32 %v147_v32, %v107_v35 }
 0x12b   :  { %v157_v46 = vmax.f32 %v148_v41, 0.0 }
 0x12e   :  { %v152_v34 = vpop.f32.mrf.mxu3 }
 0x12f   :  { %v153_v38 = vadd.f32 %v152_v34, %v115_v33 }
 0x130   :  { %v149_v37 = vpop.f32.mrf.mxu1 }
 0x131   :  { %v150_v42 = vadd.f32 %v149_v37, %v111_v36  ;;  %v159_v44 = vmax.f32 %v153_v38, 0.0 }
 0x133   :  { %v158_v47 = vmax.f32 %v150_v42, 0.0 }
 0x135   :  { %v162_v49 = vpack.c.bf16 %v158_v47, %v157_v46 }
 0x136   :  { %v154_v40 = vpop.f32.mrf.mxu3 }
 0x137   :  { %v155_v43 = vadd.f32 %v154_v40, %v119_v39 }
 0x139   :  { %v160_v45 = vmax.f32 %v155_v43, 0.0 }
 0x13b   :  { %v163_v48 = vpack.c.bf16 %v160_v45, %v159_v44 }
 0x13d   :  { %179 = vmatpush.bf16.msra.mxu2 %v163_v48 }
 0x141   :  { %180 = vmatpush.bf16.msra.mxu2 %v162_v49 }
 0x144   :  { %246 = vmatmul.msk.bf16.vlgmr.msra.gmra.mxu2 %vm131_vm2, %v161_v50 }
 0x1c7   :  { %v182_v52 = vpop.f32.mrf.mxu2 }
 0x1c8   :  { %v183_v53 = vadd.f32 %v182_v52, %v168_v51 }
 0x1ca   :  { %v189_v54 = vand.u32 2147483647, %v183_v53  ;;  %v188_v4 = vmax.f32 %v183_v53, 0.0 }
 0x1cc   :  { %v190_v55 = vsub.f32 0.0, %v189_v54 }
 0x1ce   :  { %v191_v56 = vmul.f32 1.442695, %v190_v55 }
 0x1cf   :  { %v184_v57 = vpop.f32.mrf.mxu2 }
 0x1d0   :  { %263 = vpow2.f32 %v191_v56 }
 0x1d6   :  { %v264_v58 = vpop.eup %263 }
 0x1d7   :  { %v193_v59 = vadd.f32 1.0, %v264_v58  ;;  %v196_v60 = vmul.f32 -0.5, %v264_v58  ;;  %v199_v63 = vand.u32 2147483647, %v264_v58 }
 0x1d9   :  { %265 = vlog2.f32 %v193_v59  ;;  %v197_v61 = vadd.f32 1.0, %v196_v60  ;;  %vm200_vm3 = vcmp.lt.f32.partialorder %v199_v63, 0.0004427343 }
 0x1da   :  { %267 = vtanh.f32 %v183_v53 }
 0x1db   :  { %v198_v2 = vmul.f32 %v264_v58, %v197_v61 }
 0x1df   :  { %v266_v0 = vpop.eup %265 }
 0x1e0   :  { %v195_v1 = vmul.f32 0.6931472, %v266_v0  ;;  %v268_v5 = vpop.eup %267 }
 0x1e1   :  { %v187_v8 = vmul.f32 2.0, %v268_v5 }
 0x1e2   :  { %v201_v6 = vsel %vm200_vm3, %v198_v2, %v195_v1 }
 0x1e3   :  { %v202_v7 = vadd.f32 %v201_v6, %v188_v4 }
 0x1e5   :  { %v203_v9 = vadd.f32 0.001, %v202_v7 }
 0x1e7   :  { %v207_v10 = vsel %vm206_vm4, %v187_v8, %v203_v9 }
 0x1e8   :  { %209 = vst.msk [vmem:[#allocation2] sm:$0xf] %vm208_vm5, %v207_v10 }
 0x1e9   :  { %220 = dma.vmem_to_hbm [thread:$0]  %s216_s14, 64, %s218_s17, [#allocation3]  }
 0x1ea   :  { %293 = dma.done.wait [#allocation3], 64  }
 0x1eb   :  { %294 = vsyncadd [#allocation3], 4294967232 }
 0x1ec   :  { %225 = vsyncpa [#allocation3], 1 }

</bundles_post_ra>
